<compile_context>
chip_gen: v7x
topology: tpu7x:2x2x1
jax: 0.10.0
libtpu: 0.0.40
codegen_flags: <defaults>
</compile_context>

<pallas_src>
import jax
import jax.numpy as jnp
from jax.experimental import pallas as pl
from jax.experimental.pallas import tpu as pltpu

EPS = 1e-06

LANE = 128           # TPU lane width
MAX_LANES = 8192     # max HW chunk per grid step (multiple of 128)


def _dice_kernel(x_ref, t_ref, out_ref, acc_ref):
    # x_ref:   (NB, C, CHUNK)  logits (original dtype) for NB batch elements
    # t_ref:   (NB, 1, CHUNK)  int32 class labels (-1 marks padded pixels)
    # out_ref: (NB, 1, 1)      f32 per-sample intersection core (resident
    #                          across the HW reduction axis)
    # acc_ref: (NB, 1)         f32 VMEM accumulator scratch
    hw_id = pl.program_id(1)

    @pl.when(hw_id == 0)
    def _():
        acc_ref[...] = jnp.zeros_like(acc_ref)

    x = x_ref[...].astype(jnp.float32)                 # (NB, C, CHUNK)
    t = t_ref[...]                                     # (NB, 1, CHUNK)

    # Fused softmax over the class axis + one-hot gather of the target class.
    m = jnp.max(x, axis=1, keepdims=True)              # (NB, 1, CHUNK)
    e = jnp.exp(x - m)                                 # (NB, C, CHUNK)
    denom = jnp.sum(e, axis=1, keepdims=True)          # (NB, 1, CHUNK)
    cls = jax.lax.broadcasted_iota(jnp.int32, x.shape, 1)
    numer = jnp.sum(jnp.where(cls == t, e, 0.0), axis=1, keepdims=True)
    # Padded pixels have label -1 -> numer == 0 -> zero contribution.
    prob = numer / denom                               # softmax prob at target

    acc_ref[...] += jnp.sum(prob, axis=2)              # (NB, 1)

    @pl.when(hw_id == pl.num_programs(1) - 1)
    def _():
        out_ref[...] = jnp.reshape(acc_ref[...], out_ref.shape)


def dice_loss(logits, target):
    """logits: (N, C, H, W) float; target: (N, H, W) integer labels in [0, C)."""
    N, C, H, W = logits.shape
    HW = H * W

    # --- static tiling decisions (Python ints) ---
    hw128 = ((HW + LANE - 1) // LANE) * LANE           # HW rounded up to lanes
    chunk = min(hw128, MAX_LANES)                      # multiple of 128
    hw_pad = ((HW + chunk - 1) // chunk) * chunk
    num_hw = hw_pad // chunk
    # Batch several samples per step when the HW chunk is small.
    nb = max(1, min(N, MAX_LANES // chunk))
    n_pad = ((N + nb - 1) // nb) * nb

    # --- reshape / pad (keep original logits dtype: no wrapper upcast) ---
    x2 = logits.reshape(N, C, HW)
    t2 = target.reshape(N, 1, HW).astype(jnp.int32)
    if hw_pad != HW or n_pad != N:
        x2 = jnp.pad(x2, ((0, n_pad - N), (0, 0), (0, hw_pad - HW)))
        t2 = jnp.pad(t2, ((0, n_pad - N), (0, 0), (0, hw_pad - HW)),
                     constant_values=-1)

    inter_core = pl.pallas_call(
        _dice_kernel,
        out_shape=jax.ShapeDtypeStruct((n_pad, 1, 1), jnp.float32),
        grid_spec=pltpu.PrefetchScalarGridSpec(
            num_scalar_prefetch=0,
            grid=(n_pad // nb, num_hw),
            in_specs=[
                pl.BlockSpec((nb, C, chunk), lambda b, h: (b, 0, h)),
                pl.BlockSpec((nb, 1, chunk), lambda b, h: (b, 0, h)),
            ],
            # Output block index independent of h -> resident accumulator
            # across the HW reduction axis.
            out_specs=pl.BlockSpec((nb, 1, 1), lambda b, h: (b, 0, 0)),
            scratch_shapes=[pltpu.VMEM((nb, 1), jnp.float32)],
        ),
        compiler_params=pltpu.CompilerParams(
            dimension_semantics=("parallel", "arbitrary"),
        ),
    )(x2, t2)

    inter_core = inter_core[:N, 0, 0]                  # (N,) f32

    # Analytic pieces (see notes): intersection = sum(prob_at_target) + eps*HW,
    # cardinality = sum(softmax) + sum(one_hot + eps) = 2*HW + C*HW*eps.
    intersection = inter_core + EPS * float(HW)
    cardinality = 2.0 * float(HW) + float(C) * float(HW) * EPS
    dice = 2.0 * intersection / (cardinality + EPS)
    return jnp.mean(1.0 - dice)


def _dice_loss_ref(logits, target):
    # Pure-JAX reference mirroring the PyTorch module, for a sanity check.
    N, C, H, W = logits.shape
    soft = jax.nn.softmax(logits.astype(jnp.float32), axis=1)
    oh = jax.nn.one_hot(target, C, axis=1, dtype=jnp.float32) + EPS
    inter = jnp.sum(soft * oh, axis=(1, 2, 3))
    card = jnp.sum(soft + oh, axis=(1, 2, 3))
    dice = 2.0 * inter / (card + EPS)
    return jnp.mean(1.0 - dice)


if __name__ == "__main__":
    key = jax.random.PRNGKey(0)
    k1, k2 = jax.random.split(key)

    N, C, H, W = 2, 4, 16, 16
    logits = jax.random.normal(k1, (N, C, H, W), dtype=jnp.float32)
    target = jax.random.randint(k2, (N, H, W), 0, C, dtype=jnp.int32)

    loss = dice_loss(logits, target)
    jax.block_until_ready(loss)

    ref = _dice_loss_ref(logits, target)
    assert jnp.allclose(loss, ref, atol=1e-5), (loss, ref)

    print("KERNEL_OK")
</pallas_src>

<mosaic_0001>
module attributes {stable_mosaic.version = 11 : i64} {
  func.func @_dice_kernel(%arg0: i32, %arg1: i32, %arg2: memref<2x4x256xf32, #tpu.memory_space<vmem>>, %arg3: memref<2x1x256xi32, #tpu.memory_space<vmem>>, %arg4: memref<2x1x1xf32, #tpu.memory_space<vmem>>, %arg5: memref<2x1xf32, #tpu.memory_space<vmem>>) attributes {dimension_semantics = [#tpu.dimension_semantics<parallel>, #tpu.dimension_semantics<arbitrary>], iteration_bounds = array<i64: 1, 1>, scalar_prefetch = 0 : i64, scratch_operands = 1 : i64, tpu.core_type = #tpu.core_type<tc>, window_params = [{transform_indices = @transform_0, window_bounds = array<i64: 2, 4, 256>}, {transform_indices = @transform_1, window_bounds = array<i64: 2, 1, 256>}, {transform_indices = @transform_2, window_bounds = array<i64: 2, 1, 1>}]} {
    %c0_i32 = arith.constant 0 : i32
    %0 = arith.cmpi eq, %arg1, %c0_i32 : i32
    %1 = arith.extui %0 : i1 to i32
    %c0_i32_0 = arith.constant 0 : i32
    %2 = arith.cmpi ne, %1, %c0_i32_0 : i32
    scf.if %2 {
      %cst_16 = arith.constant 0.000000e+00 : f32
      %27 = vector.broadcast %cst_16 : f32 to vector<2x1xf32>
      %c0_17 = arith.constant 0 : index
      %c0_18 = arith.constant 0 : index
      %28 = vector.load %arg5[%c0_17, %c0_18] : memref<2x1xf32, #tpu.memory_space<vmem>>, vector<2x1xf32>
      tpu.vector_store %arg5[%c0_17, %c0_18], %27 {strides = array<i32>} : memref<2x1xf32, #tpu.memory_space<vmem>>, vector<2x1xf32>,
    } else {
    }
    %c0 = arith.constant 0 : index
    %c0_1 = arith.constant 0 : index
    %c0_2 = arith.constant 0 : index
    %3 = vector.load %arg2[%c0, %c0_1, %c0_2] : memref<2x4x256xf32, #tpu.memory_space<vmem>>, vector<2x4x256xf32>
    %c0_3 = arith.constant 0 : index
    %c0_4 = arith.constant 0 : index
    %c0_5 = arith.constant 0 : index
    %4 = vector.load %arg3[%c0_3, %c0_4, %c0_5] : memref<2x1x256xi32, #tpu.memory_space<vmem>>, vector<2x1x256xi32>
    %cst = arith.constant dense<0xFF800000> : vector<2x256xf32>
    %5 = vector.multi_reduction <maximumf>, %3, %cst [1] : vector<2x4x256xf32> to vector<2x256xf32>
    %6 = vector.shape_cast %5 : vector<2x256xf32> to vector<2x1x256xf32>
    %7 = vector.broadcast %6 : vector<2x1x256xf32> to vector<2x4x256xf32>
    %8 = arith.subf %3, %7 : vector<2x4x256xf32>
    %9 = math.exp %8 : vector<2x4x256xf32>
    %cst_6 = arith.constant dense<0.000000e+00> : vector<2x256xf32>
    %10 = vector.multi_reduction <add>, %9, %cst_6 [1] : vector<2x4x256xf32> to vector<2x256xf32>
    %11 = vector.shape_cast %10 : vector<2x256xf32> to vector<2x1x256xf32>
    %12 = tpu.iota {dimensions = array<i32: 1>} : vector<2x4x256xi32>
    %13 = vector.broadcast %4 : vector<2x1x256xi32> to vector<2x4x256xi32>
    %14 = arith.cmpi eq, %12, %13 : vector<2x4x256xi32>
    %cst_7 = arith.constant 0.000000e+00 : f32
    %15 = vector.broadcast %cst_7 : f32 to vector<2x4x256xf32>
    %16 = arith.select %14, %9, %15 : vector<2x4x256xi1>, vector<2x4x256xf32>
    %cst_8 = arith.constant dense<0.000000e+00> : vector<2x256xf32>
    %17 = vector.multi_reduction <add>, %16, %cst_8 [1] : vector<2x4x256xf32> to vector<2x256xf32>
    %18 = vector.shape_cast %17 : vector<2x256xf32> to vector<2x1x256xf32>
    %19 = arith.divf %18, %11 : vector<2x1x256xf32>
    %c0_9 = arith.constant 0 : index
    %c0_10 = arith.constant 0 : index
    %20 = vector.load %arg5[%c0_9, %c0_10] : memref<2x1xf32, #tpu.memory_space<vmem>>, vector<2x1xf32>
    %cst_11 = arith.constant dense<0.000000e+00> : vector<2x1xf32>
    %21 = vector.multi_reduction <add>, %19, %cst_11 [2] : vector<2x1x256xf32> to vector<2x1xf32>
    %22 = arith.addf %20, %21 : vector<2x1xf32>
    %c0_12 = arith.constant 0 : index
    %c0_13 = arith.constant 0 : index
    %23 = vector.load %arg5[%c0_12, %c0_13] : memref<2x1xf32, #tpu.memory_space<vmem>>, vector<2x1xf32>
    tpu.vector_store %arg5[%c0_12, %c0_13], %22 {strides = array<i32>} : memref<2x1xf32, #tpu.memory_space<vmem>>, vector<2x1xf32>,
    %c0_i32_14 = arith.constant 0 : i32
    %24 = arith.cmpi eq, %arg1, %c0_i32_14 : i32
    %25 = arith.extui %24 : i1 to i32
    %c0_i32_15 = arith.constant 0 : i32
    %26 = arith.cmpi ne, %25, %c0_i32_15 : i32
    scf.if %26 {
      %c0_16 = arith.constant 0 : index
      %c0_17 = arith.constant 0 : index
      %27 = vector.load %arg5[%c0_16, %c0_17] : memref<2x1xf32, #tpu.memory_space<vmem>>, vector<2x1xf32>
      %28 = vector.shape_cast %27 : vector<2x1xf32> to vector<2x1x1xf32>
      %c0_18 = arith.constant 0 : index
      %c0_19 = arith.constant 0 : index
      %c0_20 = arith.constant 0 : index
      %29 = vector.load %arg4[%c0_18, %c0_19, %c0_20] : memref<2x1x1xf32, #tpu.memory_space<vmem>>, vector<2x1x1xf32>
      tpu.vector_store %arg4[%c0_18, %c0_19, %c0_20], %28 {strides = array<i32>} : memref<2x1x1xf32, #tpu.memory_space<vmem>>, vector<2x1x1xf32>,
    } else {
    }
    return
  }
  func.func @transform_0(%arg0: i32, %arg1: i32) -> (i32, i32, i32) {
    %c0_i32 = arith.constant 0 : i32
    %c0_i32_0 = arith.constant 0 : i32
    return %arg0, %c0_i32, %arg1 : i32, i32, i32
  }
  func.func @transform_1(%arg0: i32, %arg1: i32) -> (i32, i32, i32) {
    %c0_i32 = arith.constant 0 : i32
    %c0_i32_0 = arith.constant 0 : i32
    return %arg0, %c0_i32, %arg1 : i32, i32, i32
  }
  func.func @transform_2(%arg0: i32, %arg1: i32) -> (i32, i32, i32) {
    %c0_i32 = arith.constant 0 : i32
    %c0_i32_0 = arith.constant 0 : i32
    %c0_i32_1 = arith.constant 0 : i32
    return %arg0, %c0_i32, %c0_i32_0 : i32, i32, i32
  }
}

</mosaic_0001>

<bundles_post_ra>
// kernel: tpu_custom_call.1
= control target key start
LH: loop header
LB: loop body
LE: loop exit
PB: predicated region body
PF: predicated region fallthrough
CT: control target
= control target key end

     0   :  { %7 = vsyncpa [#allocation4], 0  ;;  %s396_s0 = inlined_call_operand.hbm [shape: f32[2,4,256], index: 0, kind: input, shape index: {}]   ;;  %s397_s1 = inlined_call_operand.hbm [shape: s32[2,1,256], index: 1, kind: input, shape index: {}]   ;;  %s398_s2 = inlined_call_operand.vmem [shape: f32[2,1,1], index: 2, kind: output, shape index: {}]  }
   0x1   :  { %8 = vsyncpa [#allocation6], 0  ;;  %s318_s9 = smov [#allocation3]   ;;  %s270_s13 = scalar_lea.hbm %s396_s0, 256 }
   0x2   :  { %s14_s10 = sshll.u32 %s318_s9, 4  ;;  %p271_p0 = scmp.ne.s32.totalorder %s396_s0, %s270_s13  ;;  %s15_s10 = int_to_ptr.vmem [resolvable:$true] %s14_s10 }
   0x3   :  { %p274_p1 = scmp.lt.u32.totalorder %s270_s13, %s396_s0 }
   0x5   :  { %p276_p2 = pnand %p274_p1, %p271_p0 }
   0x7   :  { %279 = shalt.err (!%p276_p2)
}
   0x8   :  { %s280_s18 = scalar_lea.vmem %s15_s10, 256  ;;  %p285_p4 = scmp.lt.s32.totalorder %s15_s10, %s15_s10 }
   0x9   :  { %p281_p3 = scmp.ne.s32.totalorder %s15_s10, %s280_s18  ;;  %p286_p5 = scmp.lt.s32.totalorder %s280_s18, %s280_s18 }
   0xb   :  { %p287_p6 = por %p286_p5, %p285_p4 }
   0xd   :  { %p288_p7 = pnand %p287_p6, %p281_p3 }
   0xf   :  { %291 = shalt.err (!%p288_p7)
}
  0x10   :  { %s319_s19 = smov 128   ;;  %s320_s20 = smov 8  }
  0x11   :  { %20 = dma.hbm_to_vmem [thread:$0]  %s396_s0, 256, %s15_s10, [#allocation4], %s319_s19, %s319_s19, %s320_s20  }
  0x12   :  { %s321_s23 = smov [#allocation5]   ;;  %s292_s27 = scalar_lea.hbm %s397_s1, 64 }
  0x13   :  { %s26_s24 = sshll.u32 %s321_s23, 4  ;;  %p293_p8 = scmp.ne.s32.totalorder %s397_s1, %s292_s27  ;;  %s27_s24 = int_to_ptr.vmem [resolvable:$true] %s26_s24 }
  0x14   :  { %p296_p9 = scmp.lt.u32.totalorder %s292_s27, %s397_s1 }
  0x16   :  { %p298_p10 = pnand %p296_p9, %p293_p8 }
  0x18   :  { %301 = shalt.err (!%p298_p10)
}
  0x19   :  { %s302_s4 = scalar_lea.vmem %s27_s24, 64  ;;  %p307_p12 = scmp.lt.s32.totalorder %s27_s24, %s27_s24 }
  0x1a   :  { %p303_p11 = scmp.ne.s32.totalorder %s27_s24, %s302_s4  ;;  %p308_p13 = scmp.lt.s32.totalorder %s302_s4, %s302_s4 }
  0x1c   :  { %p309_p0 = por %p308_p13, %p307_p12 }
  0x1e   :  { %p310_p1 = pnand %p309_p0, %p303_p11 }
  0x20   :  { %313 = shalt.err (!%p310_p1)
}
  0x21   :  { %s322_s0 = smov 32   ;;  %s323_s5 = smov 2  }
  0x22   :  { %32 = dma.hbm_to_vmem [thread:$0]  %s397_s1, 64, %s27_s24, [#allocation6], %s322_s0, %s322_s0, %s323_s5  }
  0x23   :  { %314 = dma.done.wait [#allocation4], 256  }
  0x24   :  { %315 = vsyncadd [#allocation4], 4294967040 }
  0x25   :  { %316 = dma.done.wait [#allocation6], 64  }
  0x26   :  { %317 = vsyncadd [#allocation6], 4294967232  ;;  %vm55_vm0 = vcmask 1043456   ;;  %v45_v0 = vld [vmem:[#allocation3] sm:$0xff]  ;;  %v46_v1 = vld [vmem:[#allocation3 + $0x8] sm:$0xff]  ;;  %v132_v31 = vlaneseq  ;;  %vm43_vm5 = vcmask 1024  }
  0x27   :  { %v51_v2 = vcombine.high %v45_v0, %v45_v0  ;;  %v56_v3 = vsel %vm55_vm0, %v45_v0, -inf  ;;  %v52_v5 = vcombine.high %v46_v1, %v46_v1  ;;  %v70_v6 = vsel %vm55_vm0, %v46_v1, -inf  ;;  %v47_v41 = vld [vmem:[#allocation5] sm:$0x3]  ;;  %v48_v43 = vld [vmem:[#allocation5 + $0x2] sm:$0x3] }
  0x28   :  { %v57_v4 = vrot.slane %v56_v3, 4  ;;  %v71_v8 = vrot.slane %v70_v6, 4  ;;  %v369_v36 = vshrl.u32 %v132_v31, 7  ;;  %vm203_vm6 = vcmask 1041409  }
  0x29   :  { %v63_v7 = vsel %vm55_vm0, %v51_v2, -inf  ;;  %v77_v11 = vsel %vm55_vm0, %v52_v5, -inf  ;;  %vm238_vm7 = vcmask 0  }
  0x2a   :  { %v58_v9 = vmax.f32 %v56_v3, %v57_v4  ;;  %v64_v10 = vrot.slane %v63_v7, 4  ;;  %v72_v12 = vmax.f32 %v70_v6, %v71_v8  ;;  %v78_v13 = vrot.slane %v77_v11, 4 }
  0x2b   :  { %v136_v40 = vsub.s32 0, %v369_v36  ;;  %v140_v42 = vsub.s32 1, %v369_v36 }
  0x2c   :  { %v59_v14 = vrot.slane %v58_v9, 2  ;;  %v65_v15 = vmax.f32 %v63_v7, %v64_v10  ;;  %v73_v16 = vrot.slane %v72_v12, 2  ;;  %v79_v17 = vmax.f32 %v77_v11, %v78_v13 }
  0x2d   :  { %v137_v44 = vrot.slane %v47_v41, %v136_v40  ;;  %v141_v45 = vrot.slane %v47_v41, %v140_v42  ;;  %v145_v46 = vrot.slane %v48_v43, %v136_v40  ;;  %v149_v47 = vrot.slane %v48_v43, %v140_v42 }
  0x2e   :  { %v60_v18 = vmax.f32 %v58_v9, %v59_v14  ;;  %v66_v19 = vrot.slane %v65_v15, 2  ;;  %v74_v20 = vmax.f32 %v72_v12, %v73_v16  ;;  %v80_v21 = vrot.slane %v79_v17, 2 }
  0x2f   :  { %vm150_vm1 = vcmp.eq.s32.totalorder %v369_v36, %v137_v44  ;;  %vm151_vm2 = vcmp.eq.s32.totalorder %v369_v36, %v141_v45  ;;  %vm152_vm3 = vcmp.eq.s32.totalorder %v369_v36, %v145_v46  ;;  %vm153_vm4 = vcmp.eq.s32.totalorder %v369_v36, %v149_v47 }
  0x30   :  { %v61_v22 = vrot.slane %v60_v18, 1  ;;  %v67_v23 = vmax.f32 %v65_v15, %v66_v19  ;;  %v75_v24 = vrot.slane %v74_v20, 1  ;;  %v81_v25 = vmax.f32 %v79_v17, %v80_v21 }
  0x32   :  { %v62_v26 = vmax.f32 %v60_v18, %v61_v22  ;;  %v68_v27 = vrot.slane %v67_v23, 1  ;;  %v76_v28 = vmax.f32 %v74_v20, %v75_v24  ;;  %v82_v29 = vrot.slane %v81_v25, 1 }
  0x34   :  { %v69_v30 = vmax.f32 %v67_v23, %v68_v27  ;;  %v83_v32 = vmax.f32 %v81_v25, %v82_v29 }
  0x36   :  { %v88_v33 = vcombine.low %v62_v26, %v69_v30  ;;  %v89_v34 = vcombine.low %v76_v28, %v83_v32 }
  0x38   :  { %v92_v35 = vsub.f32 %v45_v0, %v88_v33  ;;  %v93_v37 = vsub.f32 %v46_v1, %v89_v34 }
  0x3a   :  { %v94_v38 = vmul.f32 1.442695, %v92_v35  ;;  %v96_v39 = vmul.f32 1.442695, %v93_v37 }
  0x3c   :  { %258 = vpow2.f32 %v94_v38 }
  0x3d   :  { %260 = vpow2.f32 %v96_v39 }
  0x46   :  { %v259_v48 = vpop.eup %258 }
  0x47   :  { %v261_v49 = vpop.eup %260  ;;  %v100_v50 = vcombine.high %v259_v48, %v259_v48  ;;  %v104_v51 = vsel %vm55_vm0, %v259_v48, 0.0  ;;  %v154_v52 = vsel %vm150_vm1, %v259_v48, 0.0 }
  0x48   :  { %v105_v53 = vrot.slane %v104_v51, 4  ;;  %v158_v54 = vsel %vm55_vm0, %v154_v52, 0.0  ;;  %v101_v55 = vcombine.high %v261_v49, %v261_v49  ;;  %v118_v56 = vsel %vm55_vm0, %v261_v49, 0.0 }
  0x49   :  { %v111_v57 = vsel %vm55_vm0, %v100_v50, 0.0  ;;  %v155_v58 = vsel %vm151_vm2, %v100_v50, 0.0  ;;  %v159_v59 = vrot.slane %v158_v54, 4  ;;  %v119_v60 = vrot.slane %v118_v56, 4 }
  0x4a   :  { %v106_v61 = vadd.f32 %v105_v53, %v104_v51  ;;  %v112_v62 = vrot.slane %v111_v57, 4  ;;  %v165_v63 = vsel %vm55_vm0, %v155_v58, 0.0  ;;  %v125_v0 = vsel %vm55_vm0, %v101_v55, 0.0 }
  0x4b   :  { %v160_v1 = vadd.f32 %v159_v59, %v158_v54  ;;  %v166_v2 = vrot.slane %v165_v63, 4  ;;  %v120_v3 = vadd.f32 %v119_v60, %v118_v56  ;;  %v126_v4 = vrot.slane %v125_v0, 4 }
  0x4c   :  { %v107_v5 = vrot.slane %v106_v61, 2  ;;  %v113_v6 = vadd.f32 %v112_v62, %v111_v57  ;;  %v156_v7 = vsel %vm152_vm3, %v261_v49, 0.0  ;;  %v157_v8 = vsel %vm153_vm4, %v101_v55, 0.0 }
  0x4d   :  { %v167_v9 = vadd.f32 %v166_v2, %v165_v63  ;;  %v121_v10 = vrot.slane %v120_v3, 2  ;;  %v127_v11 = vadd.f32 %v126_v4, %v125_v0  ;;  %v172_v14 = vsel %vm55_vm0, %v156_v7, 0.0 }
  0x4e   :  { %v108_v12 = vadd.f32 %v107_v5, %v106_v61  ;;  %v114_v13 = vrot.slane %v113_v6, 2  ;;  %v179_v15 = vsel %vm55_vm0, %v157_v8, 0.0  ;;  %v161_v16 = vrot.slane %v160_v1, 2 }
  0x4f   :  { %v122_v17 = vadd.f32 %v121_v10, %v120_v3  ;;  %v128_v18 = vrot.slane %v127_v11, 2  ;;  %v173_v21 = vrot.slane %v172_v14, 4  ;;  %v180_v22 = vrot.slane %v179_v15, 4 }
  0x50   :  { %v109_v19 = vrot.slane %v108_v12, 1  ;;  %v115_v20 = vadd.f32 %v114_v13, %v113_v6  ;;  %v168_v23 = vrot.slane %v167_v9, 2  ;;  %v162_v30 = vadd.f32 %v161_v16, %v160_v1 }
  0x51   :  { %v123_v24 = vrot.slane %v122_v17, 1  ;;  %v129_v25 = vadd.f32 %v128_v18, %v127_v11  ;;  %v174_v28 = vadd.f32 %v173_v21, %v172_v14  ;;  %v181_v29 = vadd.f32 %v180_v22, %v179_v15 }
  0x52   :  { %v110_v26 = vadd.f32 %v109_v19, %v108_v12  ;;  %v116_v27 = vrot.slane %v115_v20, 1  ;;  %v169_v37 = vadd.f32 %v168_v23, %v167_v9  ;;  %v163_v41 = vrot.slane %v162_v30, 1 }
  0x53   :  { %v124_v31 = vadd.f32 %v123_v24, %v122_v17  ;;  %v130_v32 = vrot.slane %v129_v25, 1  ;;  %v175_v34 = vrot.slane %v174_v28, 2  ;;  %v182_v35 = vrot.slane %v181_v29, 2 }
  0x54   :  { %v117_v33 = vadd.f32 %v116_v27, %v115_v20  ;;  %262 = vrcp.f32 %v110_v26  ;;  %v170_v42 = vrot.slane %v169_v37, 1  ;;  %v164_v45 = vadd.f32 %v163_v41, %v162_v30 }
  0x55   :  { %v131_v38 = vadd.f32 %v130_v32, %v129_v25  ;;  %264 = vrcp.f32 %v124_v31  ;;  %v176_v39 = vadd.f32 %v175_v34, %v174_v28  ;;  %v183_v40 = vadd.f32 %v182_v35, %v181_v29 }
  0x56   :  { %266 = vrcp.f32 %v117_v33  ;;  %v171_v46 = vadd.f32 %v170_v42, %v169_v37  ;;  %v324_v59 = vmov 0.0   ;;  %v325_v62 = vmov 1966171168  }
  0x57   :  { %268 = vrcp.f32 %v131_v38  ;;  %v177_v43 = vrot.slane %v176_v39, 1  ;;  %v184_v44 = vrot.slane %v183_v40, 1  ;;  %44 = vst.msk [vmem:[#allocation2] sm:$0x3] %vm43_vm5, %v324_v59  ;;  %v223_v63 = vunpack.c.l.s4 %v325_v62 }
  0x59   :  { %v178_v47 = vadd.f32 %v177_v43, %v176_v39  ;;  %v185_v49 = vadd.f32 %v184_v44, %v183_v40  ;;  %v224_v3 = vunpack.c.0.s8 %v223_v63 }
  0x5b   :  { %v227_v4 = vsub.s32 %v224_v3, %v369_v36 }
  0x5e   :  { %v263_v48 = vpop.eup %262  ;;  %v194_v61 = vld [vmem:[#allocation2] sm:$0x3] }
  0x5f   :  { %v265_v50 = vpop.eup %264  ;;  %v187_v51 = vmul.f32 %v263_v48, %v164_v45 }
  0x60   :  { %v267_v52 = vpop.eup %266  ;;  %v191_v55 = vmul.f32 %v265_v50, %v178_v47 }
  0x61   :  { %v269_v53 = vpop.eup %268  ;;  %v189_v54 = vmul.f32 %v267_v52, %v171_v46 }
  0x62   :  { %v193_v56 = vmul.f32 %v269_v53, %v185_v49 }
  0x63   :  { %v195_v57 = vadd.f32 %v189_v54, %v187_v51 }
  0x64   :  { %v198_v58 = vadd.f32 %v193_v56, %v191_v55 }
  0x65   :  { %196 = vadd.xlane.f32.xlu0 %v195_v57 }
  0x69   :  { %199 = vadd.xlane.f32.xlu0 %v198_v58 }
  0xf2   :  { %v197_v60 = vpop.xlane.xlu0 %196 }
  0xf6   :  { %v200_v0 = vpop.xlane.xlu0 %199 }
  0xf7   :  { %v204_v1 = vsel %vm203_vm6, %v200_v0, %v197_v60 }
  0xf8   :  { %v206_v2 = vadd.f32 %v204_v1, %v194_v61 }
  0xfa   :  { %208 = vst.msk [vmem:[#allocation2] sm:$0x3] %vm43_vm5, %v206_v2 }
 0x101   :  { %v247_v5 = vld.sshfl [vmem:[#allocation2] sm:$0x11 pattern:$0x75316420] }
 0x102   :  { %v221_v6 = vcombine.high %v247_v5, %v247_v5  ;;  %v228_v7 = vrot.slane %v247_v5, %v227_v4 }
 0x104   :  { %v235_v8 = vrot.slane %v221_v6, %v227_v4  ;;  %239 = vst.msk [vmem:[%s398_s2] sm:$0x1] %vm238_vm7, %v228_v7 }
 0x106   :  { %240 = vst.msk [vmem:[%s398_s2 + $0x1] sm:$0x1] %vm238_vm7, %v235_v8 }
 0x107   :  { %245 = vsyncpa [#allocation4], 1 }
 0x108   :  { %246 = vsyncpa [#allocation6], 1 }

</bundles_post_ra>
